<compile_context>
chip_gen: v7x
topology: tpu7x:2x2x1
jax: 0.10.0
libtpu: 0.0.40
codegen_flags: <defaults>
</compile_context>

<pallas_src>
import jax
import jax.numpy as jnp
from jax.experimental import pallas as pl
from jax.experimental.pallas import tpu as pltpu


def _round_up(x, m):
    return ((x + m - 1) // m) * m


def value_kernel(x_ref, w_ref, b_ref, o_ref):
    # x_ref: (TB, F) VMEM   w_ref: (1, F) VMEM   b_ref: (1, 1) SMEM   o_ref: (TB, 1)
    x = x_ref[...]
    w = w_ref[...]                                   # (1, F) broadcasts over rows
    # VPU multiply + XLU lane reduction (keeps MXU free; output width is 1).
    y = jnp.sum(x.astype(jnp.float32) * w.astype(jnp.float32),
                axis=-1, keepdims=True)              # (TB, 1) f32
    o_ref[...] = jnp.tanh(y + b_ref[0, 0]).astype(o_ref.dtype)


def value_forward(x, w_row, b, *, max_block_rows=1024,
                  per_buffer_bytes=6 * 1024 * 1024):
    """tanh(x @ w_row.T + b) via a batch-tiled Pallas kernel.

    x:     (B, F) float32
    w_row: (1, F) float32   (same layout as PyTorch's nn.Linear(F, 1).weight)
    b:     (1, 1) float32
    returns: (B, 1) float32
    """
    B, F = x.shape

    # Tile rows: multiple of 8, capped by a conservative per-buffer VMEM budget
    # (double-buffered input must fit the default scoped VMEM on every gen).
    bytes_per_row = F * x.dtype.itemsize
    rows_fit = max(8, (per_buffer_bytes // max(bytes_per_row, 1)) // 8 * 8)
    TB = int(min(max_block_rows, rows_fit, _round_up(B, 8)))

    grid = (pl.cdiv(B, TB),)

    return pl.pallas_call(
        value_kernel,
        out_shape=jax.ShapeDtypeStruct((B, 1), x.dtype),
        grid=grid,
        in_specs=[
            pl.BlockSpec((TB, F), lambda i: (i, 0)),          # streamed batch tiles
            pl.BlockSpec((1, F), lambda i: (0, 0)),           # weight: VMEM resident
            pl.BlockSpec(memory_space=pltpu.MemorySpace.SMEM),  # bias: SMEM scalar
        ],
        out_specs=pl.BlockSpec((TB, 1), lambda i: (i, 0)),
        compiler_params=pltpu.CompilerParams(
            dimension_semantics=("parallel",),                # megacore shard on v7x
        ),
    )(x, w_row, b)


if __name__ == "__main__":
    # Small, deterministic setup consistent with the module: Linear(F -> 1) + tanh.
    batch = 8
    feature_num = 32

    key = jax.random.PRNGKey(0)
    kx, kw, kb = jax.random.split(key, 3)

    x = jax.random.normal(kx, (batch, feature_num), dtype=jnp.float32)

    # Deterministic param init mimicking nn.Linear default: U(-1/sqrt(F), 1/sqrt(F))
    bound = 1.0 / (feature_num ** 0.5)
    w_row = jax.random.uniform(kw, (1, feature_num), minval=-bound, maxval=bound,
                               dtype=jnp.float32)
    b = jax.random.uniform(kb, (1, 1), minval=-bound, maxval=bound,
                           dtype=jnp.float32)

    out = value_forward(x, w_row, b)
    out = jax.block_until_ready(out)

    # Reference check in plain JAX (same math as the PyTorch module).
    ref = jnp.tanh(x @ w_row.T + b)
    assert out.shape == (batch, 1)
    assert jnp.allclose(out, ref, atol=1e-5, rtol=1e-5)

    print("KERNEL_OK")
</pallas_src>

<mosaic_0001>
module attributes {stable_mosaic.version = 11 : i64} {
  func.func @value_kernel(%arg0: i32, %arg1: memref<8x32xf32, #tpu.memory_space<vmem>>, %arg2: memref<1x32xf32, #tpu.memory_space<vmem>>, %arg3: memref<1x1xf32, #tpu.memory_space<smem>>, %arg4: memref<8x1xf32, #tpu.memory_space<vmem>>) attributes {dimension_semantics = [#tpu.dimension_semantics<parallel>], iteration_bounds = array<i64: 1>, scalar_prefetch = 0 : i64, scratch_operands = 0 : i64, tpu.core_type = #tpu.core_type<tc>, window_params = [{transform_indices = @transform_0, window_bounds = array<i64: 8, 32>}, {pipeline_mode = #tpu.pipeline_mode<synchronous>, transform_indices = @transform_1, window_bounds = array<i64: 1, 32>}, {transform_indices = @transform_2, window_bounds = array<i64: 1, 1>}, {transform_indices = @transform_3, window_bounds = array<i64: 8, 1>}]} {
    %c0 = arith.constant 0 : index
    %c0_0 = arith.constant 0 : index
    %0 = vector.load %arg1[%c0, %c0_0] : memref<8x32xf32, #tpu.memory_space<vmem>>, vector<8x32xf32>
    %c0_1 = arith.constant 0 : index
    %c0_2 = arith.constant 0 : index
    %1 = vector.load %arg2[%c0_1, %c0_2] : memref<1x32xf32, #tpu.memory_space<vmem>>, vector<1x32xf32>
    %2 = vector.broadcast %1 : vector<1x32xf32> to vector<8x32xf32>
    %3 = arith.mulf %0, %2 : vector<8x32xf32>
    %cst = arith.constant dense<0.000000e+00> : vector<8xf32>
    %4 = vector.multi_reduction <add>, %3, %cst [1] : vector<8x32xf32> to vector<8xf32>
    %5 = vector.shape_cast %4 : vector<8xf32> to vector<8x1xf32>
    %c0_3 = arith.constant 0 : index
    %c0_4 = arith.constant 0 : index
    %6 = memref.load %arg3[%c0_3, %c0_4] : memref<1x1xf32, #tpu.memory_space<smem>>
    %7 = vector.broadcast %6 : f32 to vector<8x1xf32>
    %8 = arith.addf %5, %7 : vector<8x1xf32>
    %9 = math.tanh %8 : vector<8x1xf32>
    %c0_5 = arith.constant 0 : index
    %c0_6 = arith.constant 0 : index
    %10 = vector.load %arg4[%c0_5, %c0_6] : memref<8x1xf32, #tpu.memory_space<vmem>>, vector<8x1xf32>
    tpu.vector_store %arg4[%c0_5, %c0_6], %9 {strides = array<i32>} : memref<8x1xf32, #tpu.memory_space<vmem>>, vector<8x1xf32>,
    return
  }
  func.func @transform_0(%arg0: i32) -> (i32, i32) {
    %c0_i32 = arith.constant 0 : i32
    %c0_i32_0 = arith.constant 0 : i32
    return %arg0, %c0_i32 : i32, i32
  }
  func.func @transform_1(%arg0: i32) -> (i32, i32) {
    %c0_i32 = arith.constant 0 : i32
    %c0_i32_0 = arith.constant 0 : i32
    %c0_i32_1 = arith.constant 0 : i32
    return %c0_i32, %c0_i32_0 : i32, i32
  }
  func.func @transform_2(%arg0: i32) -> (i32, i32) {
    %c0_i32 = arith.constant 0 : i32
    %c0_i32_0 = arith.constant 0 : i32
    %c0_i32_1 = arith.constant 0 : i32
    return %c0_i32, %c0_i32_0 : i32, i32
  }
  func.func @transform_3(%arg0: i32) -> (i32, i32) {
    %c0_i32 = arith.constant 0 : i32
    %c0_i32_0 = arith.constant 0 : i32
    return %arg0, %c0_i32 : i32, i32
  }
}

</mosaic_0001>

<bundles_post_ra>
// kernel: tpu_custom_call.1
= control target key start
LH: loop header
LB: loop body
LE: loop exit
PB: predicated region body
PF: predicated region fallthrough
CT: control target
= control target key end

     0   :  { %9 = vsyncpa [#allocation4], 0  ;;  %s79_s12 = smov [#allocation3]   ;;  %s121_s0 = inlined_call_operand.hbm [shape: f32[8,32], index: 0, kind: input, shape index: {}]   ;;  %s122_s1 = inlined_call_operand.vmem [shape: f32[1,32], index: 1, kind: input, shape index: {}]   ;;  %s123_s2 = inlined_call_operand.<no memory space> [shape: f32[1,1], index: 2, kind: input, shape index: {}]   ;;  %s124_s3 = inlined_call_operand.vmem [shape: f32[8,1], index: 3, kind: output, shape index: {}]  }
   0x1   :  { %s16_s13 = sshll.u32 %s79_s12, 4  ;;  %s55_s16 = scalar_lea.hbm %s121_s0, 128  ;;  %s17_s13 = int_to_ptr.vmem [resolvable:$true] %s16_s13 }
   0x2   :  { %p56_p0 = scmp.ne.s32.totalorder %s121_s0, %s55_s16  ;;  %p59_p1 = scmp.lt.u32.totalorder %s55_s16, %s121_s0 }
   0x4   :  { %p61_p2 = pnand %p59_p1, %p56_p0 }
   0x6   :  { %64 = shalt.err (!%p61_p2)
}
   0x7   :  { %s65_s21 = scalar_lea.vmem %s17_s13, 128  ;;  %p70_p4 = scmp.lt.s32.totalorder %s17_s13, %s17_s13 }
   0x8   :  { %p66_p3 = scmp.ne.s32.totalorder %s17_s13, %s65_s21  ;;  %p71_p5 = scmp.lt.s32.totalorder %s65_s21, %s65_s21 }
   0xa   :  { %p72_p6 = por %p71_p5, %p70_p4 }
   0xc   :  { %p73_p7 = pnand %p72_p6, %p66_p3 }
   0xe   :  { %76 = shalt.err (!%p73_p7)
}
   0xf   :  { %19 = dma.hbm_to_vmem [thread:$0]  %s121_s0, 128, %s17_s13, [#allocation4]  }
  0x10   :  { %77 = dma.done.wait [#allocation4], 128  }
  0x11   :  { %78 = vsyncadd [#allocation4], 4294967168  ;;  %v27_v0 = vld [vmem:[#allocation3] sm:$0xff]  ;;  %vm36_vm0 = vcmask 261120   ;;  %v41_v4 = vstv %s123_s2  ;;  %vm44_vm1 = vcmask 7168  }
  0x12   :  { %v51_v1 = vld [vmem:[%s122_s1] ss:$0 sm:$0xff] }
  0x13   :  { %v35_v2 = vmul.f32 %v51_v1, %v27_v0 }
  0x15   :  { %v37_v3 = vsel %vm36_vm0, %v35_v2, 0.0 }
  0x16   :  { %38 = vadd.xlane.f32.xlu0 %v37_v3 }
  0xa3   :  { %v39_v5 = vpop.xlane.xlu0 %38 }
  0xa4   :  { %v42_v6 = vadd.f32 %v41_v4, %v39_v5 }
  0xa6   :  { %53 = vtanh.f32 %v42_v6 }
  0xb0   :  { %v54_v7 = vpop.eup %53 }
  0xb1   :  { %45 = vst.msk [vmem:[%s124_s3] sm:$0xff] %vm44_vm1, %v54_v7 }
  0xb2   :  { %50 = vsyncpa [#allocation4], 1 }

</bundles_post_ra>
